<compile_context>
chip_gen: v7x
topology: tpu7x:2x2x1
jax: 0.10.0
libtpu: 0.0.40
codegen_flags: <defaults>
</compile_context>

<pallas_src>
import jax
import jax.numpy as jnp
from jax.experimental import pallas as pl
from jax.experimental.pallas import tpu as pltpu


def hybrid_qcnn_kernel(x_ref, theta_ref, w_ref, b_ref, o_ref):
    # x_ref:     (3, TB, P_pad) f32 VMEM  -- per-qubit pre-summed pixel angles
    # theta_ref: (3,)           f32 SMEM  -- trainable per-qubit rotation
    # w_ref:     (P_pad, C_pad) f32 VMEM  -- fc weight (K rows >= P zero-padded)
    # b_ref:     (1, C_pad)     f32 VMEM  -- fc bias (cols >= C zero-padded)
    # o_ref:     (TB, C_pad)    f32 VMEM  -- padded logits (lane-dense stores)

    # Quantum-conv surrogate: angle_q = (sum of qubit q's 3 pixels) + theta_q.
    # The pixel sum was hoisted to the wrapper (3x less HBM read); only the
    # scalar add + cos (EUP) + mean stay in-kernel, hidden under the DMA.
    a0 = x_ref[0] + theta_ref[0]
    a1 = x_ref[1] + theta_ref[1]
    a2 = x_ref[2] + theta_ref[2]
    # (TB, P_pad); padded patch lanes are cos(theta_q) but the matching fc
    # weight rows are zero-padded, so they do not contribute to the logits.
    feats = (jnp.cos(a0) + jnp.cos(a1) + jnp.cos(a2)) * (1.0 / 3.0)

    # Fully-connected head on the MXU: (TB, P_pad) @ (P_pad, C_pad) + b.
    # Kept in f32: the matmul is nowhere near the binding slot (mem-bound).
    logits = jnp.dot(feats, w_ref[...], preferred_element_type=jnp.float32)
    o_ref[...] = logits + b_ref[...]


def _round_up(x, m):
    return ((x + m - 1) // m) * m


def _patch_angle_sums(x, stride=3):
    """x: (B, 1, H, W) -> (3, B, P) per-qubit pixel sums, single fused pass.

    Patch flatten order is k = r*3 + c (row-major inside the 3x3 window);
    qubit q gets pixels k in {3q, 3q+1, 3q+2}, i.e. window row r == q, so the
    per-qubit sum is a sum over the window-column axis.
    """
    # TODO(synk): overlapping strides (stride != 3) are not implemented here.
    B, _, H, W = x.shape
    assert stride == 3 and H == W and H % stride == 0
    n = H // stride
    p = x[:, 0].astype(jnp.float32).reshape(B, n, 3, n, 3)   # (B, i, r, j, c)
    sums = p.sum(axis=4)                                     # (B, i, r, j)
    sums = jnp.transpose(sums, (2, 0, 1, 3))                 # (r, B, i, j)
    return sums.reshape(3, B, n * n)                         # patch idx = i*n + j


def _pick_batch_tile(B):
    """Batch tile: multiple of 8, capped at 2048; >= 2 grid tiles when B allows
    so v7x's second TensorCore gets work via dimension_semantics=('parallel',)."""
    B8 = _round_up(B, 8)
    TB = min(2048, B8)
    if B8 > 8 and B8 // TB < 2:
        TB = _round_up((B8 + 1) // 2, 8)
    B_pad = _round_up(B8, TB)
    return TB, B_pad


def hybrid_qcnn_forward(x, theta, w, b, stride=3):
    """x: (B,1,30,30); theta: (3,); w: (P, C) (= torch fc.weight.T); b: (C,)."""
    B, _, H, _ = x.shape
    n = H // stride
    P = n * n
    C = w.shape[1]
    assert w.shape[0] == P

    # Lane/sublane padding.
    P_pad = _round_up(P, 128)                                  # 100 -> 128
    C_pad = _round_up(C, 128)                                  # 9   -> 128
    TB, B_pad = _pick_batch_tile(B)
    num_tiles = B_pad // TB

    # Single fused producer: reshape -> sum(c) -> transpose -> pad.
    angles = jnp.pad(_patch_angle_sums(x, stride),
                     ((0, 0), (0, B_pad - B), (0, P_pad - P)))  # (3, B_pad, P_pad)

    # Zero-padding of w_p is load-bearing (padded feature lanes are nonzero).
    w_p = jnp.pad(w.astype(jnp.float32),
                  ((0, P_pad - P), (0, C_pad - C)))             # (P_pad, C_pad)
    b_p = jnp.pad(b.reshape(1, C).astype(jnp.float32),
                  ((0, 0), (0, C_pad - C)))                     # (1, C_pad)
    theta_f = theta.astype(jnp.float32)

    cost = pl.CostEstimate(
        flops=2 * B_pad * P_pad * C_pad + 4 * B_pad * P_pad,
        transcendentals=3 * B_pad * P_pad,
        bytes_accessed=4 * (3 * B_pad * P_pad + P_pad * C_pad + C_pad
                            + B_pad * C_pad),
    )

    logits_p = pl.pallas_call(
        hybrid_qcnn_kernel,
        out_shape=jax.ShapeDtypeStruct((B_pad, C_pad), jnp.float32),
        grid=(num_tiles,),
        in_specs=[
            # angles: batch-tiled, pipelined / double-buffered by Pallas.
            pl.BlockSpec((3, TB, P_pad), lambda i: (0, i, 0)),
            # theta: tiny scalar vector, whole array in SMEM.
            pl.BlockSpec(memory_space=pltpu.MemorySpace.SMEM),
            # fc weight / bias: replicated across grid steps.
            pl.BlockSpec((P_pad, C_pad), lambda i: (0, 0)),
            pl.BlockSpec((1, C_pad), lambda i: (0, 0)),
        ],
        out_specs=pl.BlockSpec((TB, C_pad), lambda i: (i, 0)),
        compiler_params=pltpu.CompilerParams(
            dimension_semantics=("parallel",),
            # Explicit scoped-VMEM budget: TB=2048 double-buffered is ~8.5 MiB,
            # 48 MiB leaves headroom on v5e/v6e and fits v7x's 64 MiB physical.
            vmem_limit_bytes=48 * 1024 * 1024,
        ),
        cost_estimate=cost,
    )(angles, theta_f, w_p, b_p)

    return logits_p[:B, :C]


if __name__ == "__main__":
    key = jax.random.PRNGKey(0)
    k_theta, k_w, k_b, k_x = jax.random.split(key, 4)

    n_classes = 9
    stride = 3
    n_patch = (30 // stride) ** 2  # 100

    # Deterministic parameter init (synthetic, no checkpoint load).
    theta = jax.random.uniform(k_theta, (3,), jnp.float32, 0.0, 2.0 * jnp.pi)
    # nn.Linear(n_patch, n_classes): torch weight is (C, P); we pass W^T = (P, C).
    fc_w = (jax.random.normal(k_w, (n_patch, n_classes), jnp.float32)
            * (1.0 / jnp.sqrt(n_patch)))
    fc_b = jax.random.normal(k_b, (n_classes,), jnp.float32) * 0.01

    # Input consistent with the module: (B, 1, 30, 30), pixel values in [0, 1].
    x = jax.random.uniform(k_x, (2, 1, 30, 30), jnp.float32)

    logits = hybrid_qcnn_forward(x, theta, fc_w, fc_b, stride=stride)
    jax.block_until_ready(logits)
    assert logits.shape == (2, n_classes)
    assert bool(jnp.all(jnp.isfinite(logits)))

    # Pure-JAX reference of the same surrogate, straight from the definition.
    def ref_forward(x, theta, w, b):
        B = x.shape[0]
        img = x[:, 0]
        n = 30 // stride
        p = img.reshape(B, n, 3, n, 3).transpose(0, 1, 3, 2, 4).reshape(B, n * n, 9)
        ang = p.reshape(B, n * n, 3, 3).sum(-1) + theta            # (B, P, 3)
        feats = jnp.cos(ang).mean(-1)                              # (B, P)
        return feats @ w + b

    ref = ref_forward(x, theta, fc_w, fc_b)
    assert bool(jnp.allclose(logits, ref, atol=1e-4, rtol=1e-4))
    print("KERNEL_OK")
</pallas_src>

<mosaic_0001>
module attributes {stable_mosaic.version = 11 : i64} {
  func.func @hybrid_qcnn_kernel(%arg0: i32, %arg1: memref<3x8x128xf32, #tpu.memory_space<vmem>>, %arg2: memref<3xf32, #tpu.memory_space<smem>>, %arg3: memref<128x128xf32, #tpu.memory_space<vmem>>, %arg4: memref<1x128xf32, #tpu.memory_space<vmem>>, %arg5: memref<8x128xf32, #tpu.memory_space<vmem>>) attributes {dimension_semantics = [#tpu.dimension_semantics<parallel>], iteration_bounds = array<i64: 1>, scalar_prefetch = 0 : i64, scratch_operands = 0 : i64, tpu.core_type = #tpu.core_type<tc>, window_params = [{transform_indices = @transform_0, window_bounds = array<i64: 3, 8, 128>}, {transform_indices = @transform_1, window_bounds = array<i64: 3>}, {pipeline_mode = #tpu.pipeline_mode<synchronous>, transform_indices = @transform_2, window_bounds = array<i64: 128, 128>}, {pipeline_mode = #tpu.pipeline_mode<synchronous>, transform_indices = @transform_3, window_bounds = array<i64: 1, 128>}, {transform_indices = @transform_4, window_bounds = array<i64: 8, 128>}]} {
    %c0 = arith.constant 0 : index
    %c0_0 = arith.constant 0 : index
    %c0_1 = arith.constant 0 : index
    %0 = vector.load %arg1[%c0, %c0_0, %c0_1] : memref<3x8x128xf32, #tpu.memory_space<vmem>>, vector<1x8x128xf32>
    %1 = vector.shape_cast %0 : vector<1x8x128xf32> to vector<8x128xf32>
    %c0_2 = arith.constant 0 : index
    %2 = memref.load %arg2[%c0_2] : memref<3xf32, #tpu.memory_space<smem>>
    %3 = vector.broadcast %2 : f32 to vector<8x128xf32>
    %4 = arith.addf %1, %3 : vector<8x128xf32>
    %c1 = arith.constant 1 : index
    %c0_3 = arith.constant 0 : index
    %c0_4 = arith.constant 0 : index
    %5 = vector.load %arg1[%c1, %c0_3, %c0_4] : memref<3x8x128xf32, #tpu.memory_space<vmem>>, vector<1x8x128xf32>
    %6 = vector.shape_cast %5 : vector<1x8x128xf32> to vector<8x128xf32>
    %c1_5 = arith.constant 1 : index
    %7 = memref.load %arg2[%c1_5] : memref<3xf32, #tpu.memory_space<smem>>
    %8 = vector.broadcast %7 : f32 to vector<8x128xf32>
    %9 = arith.addf %6, %8 : vector<8x128xf32>
    %c2 = arith.constant 2 : index
    %c0_6 = arith.constant 0 : index
    %c0_7 = arith.constant 0 : index
    %10 = vector.load %arg1[%c2, %c0_6, %c0_7] : memref<3x8x128xf32, #tpu.memory_space<vmem>>, vector<1x8x128xf32>
    %11 = vector.shape_cast %10 : vector<1x8x128xf32> to vector<8x128xf32>
    %c2_8 = arith.constant 2 : index
    %12 = memref.load %arg2[%c2_8] : memref<3xf32, #tpu.memory_space<smem>>
    %13 = vector.broadcast %12 : f32 to vector<8x128xf32>
    %14 = arith.addf %11, %13 : vector<8x128xf32>
    %15 = math.cos %4 : vector<8x128xf32>
    %16 = math.cos %9 : vector<8x128xf32>
    %17 = arith.addf %15, %16 : vector<8x128xf32>
    %18 = math.cos %14 : vector<8x128xf32>
    %19 = arith.addf %17, %18 : vector<8x128xf32>
    %cst = arith.constant 0.333333343 : f32
    %20 = vector.broadcast %cst : f32 to vector<8x128xf32>
    %21 = arith.mulf %19, %20 : vector<8x128xf32>
    %c0_9 = arith.constant 0 : index
    %c0_10 = arith.constant 0 : index
    %22 = vector.load %arg3[%c0_9, %c0_10] : memref<128x128xf32, #tpu.memory_space<vmem>>, vector<128x128xf32>
    %cst_11 = arith.constant dense<0.000000e+00> : vector<8x128xf32>
    %23 = tpu.matmul %21, %22, %cst_11 {dimension_numbers = #tpu.dot_dimension_numbers<[1], [0], [0], [1], [0, 0, 1, 1], [], []>} : vector<8x128xf32>, vector<128x128xf32>, vector<8x128xf32> -> vector<8x128xf32>
    %c0_12 = arith.constant 0 : index
    %c0_13 = arith.constant 0 : index
    %24 = vector.load %arg4[%c0_12, %c0_13] : memref<1x128xf32, #tpu.memory_space<vmem>>, vector<1x128xf32>
    %25 = vector.broadcast %24 : vector<1x128xf32> to vector<8x128xf32>
    %26 = arith.addf %23, %25 : vector<8x128xf32>
    %c0_14 = arith.constant 0 : index
    %c0_15 = arith.constant 0 : index
    %27 = vector.load %arg5[%c0_14, %c0_15] : memref<8x128xf32, #tpu.memory_space<vmem>>, vector<8x128xf32>
    tpu.vector_store %arg5[%c0_14, %c0_15], %26 {strides = array<i32>} : memref<8x128xf32, #tpu.memory_space<vmem>>, vector<8x128xf32>,
    return
  }
  func.func @transform_0(%arg0: i32) -> (i32, i32, i32) {
    %c0_i32 = arith.constant 0 : i32
    %c0_i32_0 = arith.constant 0 : i32
    %c0_i32_1 = arith.constant 0 : i32
    return %c0_i32, %arg0, %c0_i32_0 : i32, i32, i32
  }
  func.func @transform_1(%arg0: i32) -> i32 {
    %c0_i32 = arith.constant 0 : i32
    %c0_i32_0 = arith.constant 0 : i32
    return %c0_i32 : i32
  }
  func.func @transform_2(%arg0: i32) -> (i32, i32) {
    %c0_i32 = arith.constant 0 : i32
    %c0_i32_0 = arith.constant 0 : i32
    %c0_i32_1 = arith.constant 0 : i32
    return %c0_i32, %c0_i32_0 : i32, i32
  }
  func.func @transform_3(%arg0: i32) -> (i32, i32) {
    %c0_i32 = arith.constant 0 : i32
    %c0_i32_0 = arith.constant 0 : i32
    %c0_i32_1 = arith.constant 0 : i32
    return %c0_i32, %c0_i32_0 : i32, i32
  }
  func.func @transform_4(%arg0: i32) -> (i32, i32) {
    %c0_i32 = arith.constant 0 : i32
    %c0_i32_0 = arith.constant 0 : i32
    return %arg0, %c0_i32 : i32, i32
  }
}

</mosaic_0001>

<bundles_post_ra>
// kernel: tpu_custom_call.1
= control target key start
LH: loop header
LB: loop body
LE: loop exit
PB: predicated region body
PF: predicated region fallthrough
CT: control target
= control target key end

     0   :  { %9 = vsyncpa [#allocation3], 0  ;;  %s1021_s0 = inlined_call_operand.hbm [shape: f32[3,8,128], index: 0, kind: input, shape index: {}]   ;;  %s1022_s1 = inlined_call_operand.vmem [shape: f32[3], index: 1, kind: input, shape index: {}]   ;;  %s1023_s2 = inlined_call_operand.hbm [shape: f32[128,128], index: 2, kind: input, shape index: {}]   ;;  %s1024_s3 = inlined_call_operand.vmem [shape: f32[1,128], index: 3, kind: input, shape index: {}]   ;;  %s1025_s4 = inlined_call_operand.hbm [shape: f32[8,128], index: 4, kind: output, shape index: {}]  }
   0x1   :  { %10 = vsyncpa [#allocation5], 0 }
   0x2   :  { %11 = vsyncpa [#allocation8], 0 }
   0x3   :  { %12 = vsyncpa [#allocation4], 0  ;;  %s712_s15 = smov [#allocation2]   ;;  %s31_s19 = sshll.u32 %s1022_s1, 4  ;;  %s32_s19 = int_to_ptr.vmem [resolvable:$true] %s31_s19 }
   0x4   :  { %s18_s16 = sshll.u32 %s712_s15, 4  ;;  %s626_s22 = scalar_lea.hbm %s1021_s0, 384  ;;  %s19_s16 = int_to_ptr.vmem [resolvable:$true] %s18_s16 }
   0x5   :  { %p627_p0 = scmp.ne.s32.totalorder %s1021_s0, %s626_s22  ;;  %p630_p1 = scmp.lt.u32.totalorder %s626_s22, %s1021_s0 }
   0x7   :  { %p632_p2 = pnand %p630_p1, %p627_p0 }
   0x9   :  { %635 = shalt.err (!%p632_p2)
}
   0xa   :  { %s636_s27 = scalar_lea.vmem %s19_s16, 384  ;;  %p641_p4 = scmp.lt.s32.totalorder %s19_s16, %s19_s16 }
   0xb   :  { %p637_p3 = scmp.ne.s32.totalorder %s19_s16, %s636_s27  ;;  %p642_p5 = scmp.lt.s32.totalorder %s636_s27, %s636_s27 }
   0xd   :  { %p643_p6 = por %p642_p5, %p641_p4 }
   0xf   :  { %p644_p7 = pnand %p643_p6, %p637_p3 }
  0x11   :  { %647 = shalt.err (!%p644_p7)
}
  0x12   :  { %s713_s1 = smov 128   ;;  %s714_s28 = smov 8  }
  0x13   :  { %24 = dma.hbm_to_vmem [thread:$0]  %s1021_s0, 384, %s19_s16, [#allocation3], %s713_s1, %s713_s1, %s714_s28  }
  0x14   :  { %s648_s5 = scalar_lea.vmem %s32_s19, 16  ;;  %p653_p9 = scmp.lt.s32.totalorder %s32_s19, %s32_s19 }
  0x15   :  { %p649_p8 = scmp.ne.s32.totalorder %s32_s19, %s648_s5  ;;  %p654_p10 = scmp.lt.s32.totalorder %s648_s5, %s648_s5 }
  0x17   :  { %p655_p11 = por %p654_p10, %p653_p9 }
  0x19   :  { %p656_p12 = pnand %p655_p11, %p649_p8 }
  0x1b   :  { %659 = shalt.err (!%p656_p12)
}
  0x1c   :  { %s715_s6 = smov [#allocation6]   ;;  %s716_s7 = smov [#allocation7]  }
  0x1d   :  { %34 = dma.vmem_to_smem %s32_s19, 16, %s715_s6, [#allocation5]  }
  0x1e   :  { %s40_s8 = sshll.u32 %s716_s7, 4  ;;  %s660_s11 = scalar_lea.hbm %s1023_s2, 2048  ;;  %s41_s8 = int_to_ptr.vmem [resolvable:$true] %s40_s8 }
  0x1f   :  { %p661_p13 = scmp.ne.s32.totalorder %s1023_s2, %s660_s11  ;;  %p664_p0 = scmp.lt.u32.totalorder %s660_s11, %s1023_s2 }
  0x21   :  { %p666_p1 = pnand %p664_p0, %p661_p13 }
  0x23   :  { %669 = shalt.err (!%p666_p1)
}
  0x24   :  { %s670_s15 = scalar_lea.vmem %s41_s8, 2048  ;;  %p675_p3 = scmp.lt.s32.totalorder %s41_s8, %s41_s8 }
  0x25   :  { %p671_p2 = scmp.ne.s32.totalorder %s41_s8, %s670_s15  ;;  %p676_p4 = scmp.lt.s32.totalorder %s670_s15, %s670_s15 }
  0x27   :  { %p677_p5 = por %p676_p4, %p675_p3 }
  0x29   :  { %p678_p6 = pnand %p677_p5, %p671_p2 }
  0x2b   :  { %681 = shalt.err (!%p678_p6)
}
  0x2c   :  { %46 = dma.hbm_to_vmem [thread:$0]  %s1023_s2, 2048, %s41_s8, [#allocation8], %s713_s1, %s713_s1, %s714_s28  }
  0x2d   :  { %704 = dma.done.wait [#allocation3], 384  }
  0x2e   :  { %705 = vsyncadd [#allocation3], 4294966912 }
  0x2f   :  { %706 = dma.done.wait [#allocation5], 16  }
  0x30   :  { %707 = vsyncadd [#allocation5], 4294967280 }
  0x31   :  { %708 = dma.done.wait [#allocation8], 2048  }
  0x32   :  { %709 = vsyncadd [#allocation8], 4294965248 }
  0x33   :  { %58 = sfence }
  0x34   :  { %v385_v0 = vld [vmem:[#allocation7] sm:$0xff]  ;;  %v386_v1 = vld [vmem:[#allocation7 + $0x8] sm:$0xff]  ;;  %v387_v2 = vld [vmem:[#allocation7 + $0x10] sm:$0xff]  ;;  %v717_v3 = vmov 0.0|0.0   ;;  %vm718_vm0 = vmmov 0   ;;  %v719_v6 = vmov 0.0  }
  0x35   :  { %563 = vmatprep.subr.bf16.mxu0 %v717_v3  ;;  %v564_v4 = vpack.c.bf16 %v386_v1, %v385_v0  ;;  %v388_v5 = vld [vmem:[#allocation7 + $0x18] sm:$0xff]  ;;  %560 = vmatprep.mubr.msk.f32.mxu0 %vm718_vm0, %v719_v6  ;;  %s60_s18 = sld [smem:[#allocation6]]  ;;  %s496_s2 = sld [smem:[#allocation6 + $0x1]]  ;;  %v389_v8 = vld [vmem:[#allocation7 + $0x20] sm:$0xff]  ;;  %v390_v9 = vld [vmem:[#allocation7 + $0x28] sm:$0xff] }
  0x36   :  { %v567_v7 = vpack.c.bf16 %v388_v5, %v387_v2  ;;  %s497_s19 = sld [smem:[#allocation6 + $0x2]]  ;;  %v59_v10 = vld [vmem:[#allocation2] sm:$0xff]  ;;  %v64_v11 = vld [vmem:[#allocation2 + $0x8] sm:$0xff]  ;;  %v570_v12 = vpack.c.bf16 %v390_v9, %v389_v8  ;;  %v69_v14 = vld [vmem:[#allocation2 + $0x10] sm:$0xff]  ;;  %v720_v61 = vmov 683565275  }
  0x37   :  { %565 = vmatpush3.bf16.msra.mxu0 %v564_v4  ;;  %v391_v15 = vld [vmem:[#allocation7 + $0x30] sm:$0xff]  ;;  %v392_v16 = vld [vmem:[#allocation7 + $0x38] sm:$0xff]  ;;  %v393_v25 = vld [vmem:[#allocation7 + $0x40] sm:$0xff]  ;;  %v721_v63 = vmov 2475754826   ;;  %s726_s22 = smov [#allocation9]  }
  0x38   :  { %566 = vmatprep.subr.bf16.mxu0 %v717_v3  ;;  %v573_v24 = vpack.c.bf16 %v392_v16, %v391_v15  ;;  %v394_v26 = vld [vmem:[#allocation7 + $0x48] sm:$0xff]  ;;  %v395_v29 = vld [vmem:[#allocation7 + $0x50] sm:$0xff]  ;;  %v396_v30 = vld [vmem:[#allocation7 + $0x58] sm:$0xff]  ;;  %v722_v1 = vmov 2131351028   ;;  %s485_s23 = sshll.u32 %s726_s22, 4  ;;  %s486_s23 = int_to_ptr.vmem [resolvable:$true] %s485_s23 }
  0x39   :  { %v799_v31 = vld [vmem:[#allocation7 + $0x60] sm:$0xff]  ;;  %v398_v33 = vld [vmem:[#allocation7 + $0x68] sm:$0xff]  ;;  %v576_v39 = vpack.c.bf16 %v394_v26, %v393_v25  ;;  %v579_v40 = vpack.c.bf16 %v396_v30, %v395_v29  ;;  %v806_v41 = vld [vmem:[#allocation7 + $0x70] sm:$0xff]  ;;  %v723_v4 = vmov 2102212464   ;;  %s682_s24 = scalar_lea.vmem %s486_s23, 128  ;;  %p687_p8 = scmp.lt.s32.totalorder %s486_s23, %s486_s23 }
  0x3a   :  { %v808_v42 = vld [vmem:[#allocation7 + $0x78] sm:$0xff]  ;;  %v582_v44 = vpack.c.bf16 %v398_v33, %v799_v31  ;;  %v724_v6 = vmov 920167782   ;;  %p683_p7 = scmp.ne.s32.totalorder %s486_s23, %s682_s24  ;;  %p688_p9 = scmp.lt.s32.totalorder %s682_s24, %s682_s24 }
  0x3b   :  { %568 = vmatpush3.bf16.msra.mxu0 %v567_v7  ;;  %v61_v13 = vstv %s60_s18  ;;  %v66_v18 = vstv %s496_s2  ;;  %v585_v50 = vpack.c.bf16 %v808_v42, %v806_v41 }
  0x3c   :  { %569 = vmatprep.subr.bf16.mxu0 %v717_v3  ;;  %v788_v17 = vadd.f32 %v61_v13, %v59_v10  ;;  %v790_v19 = vadd.f32 %v66_v18, %v64_v11  ;;  %v71_v20 = vstv %s497_s19  ;;  %p689_p10 = por %p688_p9, %p687_p8 }
  0x3d   :  { %v792_v21 = vadd.f32 %v71_v20, %v69_v14  ;;  %v725_v14 = vmov 1326507024  }
  0x3e   :  { %v73_v22 = vand.u32 2147483647, %v788_v17  ;;  %v76_v23 = vand.u32 2139095040, %v788_v17  ;;  %v176_v27 = vand.u32 2147483647, %v790_v19  ;;  %v179_v28 = vand.u32 2139095040, %v790_v19  ;;  %p690_p11 = pnand %p689_p10, %p683_p7 }
  0x3f   :  { %571 = vmatpush3.bf16.msra.mxu0 %v570_v12  ;;  %v283_v38 = vand.u32 2139095040, %v792_v21 }
  0x40   :  { %572 = vmatprep.subr.bf16.mxu0 %v717_v3  ;;  %v77_v32 = vshrl.u32 %v76_v23, 23  ;;  %v80_v34 = vand.u32 8388607, %v73_v22  ;;  %v180_v35 = vshrl.u32 %v179_v28, 23  ;;  %v183_v36 = vand.u32 8388607, %v176_v27 }
  0x41   :  { %v284_v46 = vshrl.u32 %v283_v38, 23 }
  0x42   :  { %v498_v37 = vadd.s32 4294967169, %v77_v32  ;;  %v502_v43 = vadd.s32 4294967169, %v180_v35  ;;  %v81_v47 = vor.u32 8388608, %v80_v34  ;;  %v184_v48 = vor.u32 8388608, %v183_v36 }
  0x43   :  { %574 = vmatpush3.bf16.msra.mxu0 %v573_v24  ;;  %v506_v51 = vadd.s32 4294967169, %v284_v46 }
  0x44   :  { %575 = vmatprep.subr.bf16.mxu0 %v717_v3  ;;  %v83_v45 = vadd.s32 1, %v498_v37  ;;  %v186_v49 = vadd.s32 1, %v502_v43  ;;  %v815_v56 = vshll.u32 %v81_v47, 8  ;;  %v819_v58 = vshll.u32 %v184_v48, 8 }
  0x45   :  { %v821_v59 = vadd.s32 1, %v506_v51 }
  0x46   :  { %vm84_vm1 = vcmp.gt.s32.totalorder %v83_v45, 0  ;;  %vm187_vm2 = vcmp.gt.s32.totalorder %v186_v49, 0 }
  0x47   :  { %577 = vmatpush3.bf16.msra.mxu0 %v576_v39  ;;  %v85_v52 = vsel %vm84_vm1, %v83_v45, 0  ;;  %v188_v55 = vsel %vm187_vm2, %v186_v49, 0  ;;  %vm291_vm12 = vcmp.gt.s32.totalorder %v821_v59, 0 }
  0x48   :  { %578 = vmatprep.subr.bf16.mxu0 %v717_v3  ;;  %v86_v53 = vshrl.u32 %v85_v52, 5  ;;  %v87_v54 = vand.u32 31, %v85_v52  ;;  %v817_v57 = vand.u32 31, %v188_v55  ;;  %v828_v8 = vshrl.u32 %v188_v55, 5 }
  0x4a   :  { %v88_v60 = vsub.s32 32, %v87_v54  ;;  %v90_v62 = vshll.u32 %v720_v61, %v87_v54  ;;  %v93_v0 = vshll.u32 %v721_v63, %v87_v54  ;;  %v96_v2 = vshll.u32 %v722_v1, %v87_v54 }
  0x4b   :  { %580 = vmatpush3.bf16.msra.mxu0 %v579_v40  ;;  %v99_v5 = vshll.u32 %v723_v4, %v87_v54  ;;  %v102_v7 = vshll.u32 %v724_v6, %v87_v54  ;;  %vm105_vm3 = vcmp.lt.s32.totalorder %v86_v53, 1  ;;  %vm106_vm4 = vcmp.lt.s32.totalorder %v86_v53, 2 }
  0x4c   :  { %581 = vmatprep.subr.bf16.mxu0 %v717_v3  ;;  %v89_v9 = vshrl.u32 %v720_v61, %v88_v60  ;;  %v91_v10 = vshrl.u32 %v721_v63, %v88_v60  ;;  %v94_v11 = vshrl.u32 %v722_v1, %v88_v60  ;;  %v97_v12 = vshrl.u32 %v723_v4, %v88_v60 }
  0x4d   :  { %v100_v13 = vshrl.u32 %v724_v6, %v88_v60  ;;  %v103_v15 = vshrl.u32 %v725_v14, %v88_v60  ;;  %vm108_vm5 = vcmp.lt.s32.totalorder %v86_v53, 4  ;;  %v191_v23 = vsub.s32 32, %v817_v57 }
  0x4e   :  { %v92_v16 = vor.u32 %v91_v10, %v90_v62  ;;  %v95_v18 = vor.u32 %v94_v11, %v93_v0  ;;  %v98_v20 = vor.u32 %v97_v12, %v96_v2  ;;  %vm107_vm6 = vcmp.lt.s32.totalorder %v86_v53, 3 }
  0x4f   :  { %583 = vmatpush3.bf16.msra.mxu0 %v582_v44  ;;  %v101_v24 = vor.u32 %v100_v13, %v99_v5  ;;  %v104_v25 = vor.u32 %v103_v15, %v102_v7  ;;  %v193_v26 = vshll.u32 %v720_v61, %v817_v57  ;;  %v196_v35 = vshll.u32 %v721_v63, %v817_v57 }
  0x50   :  { %584 = vmatprep.subr.bf16.mxu0 %v717_v3  ;;  %v109_v28 = vsel %vm105_vm3, %v89_v9, %v92_v16  ;;  %v110_v29 = vsel %vm108_vm5, %v98_v20, 2102212464  ;;  %v113_v30 = vsel %vm105_vm3, %v92_v16, %v95_v18  ;;  %v117_v31 = vsel %vm105_vm3, %v95_v18, %v98_v20 }
  0x51   :  { %v111_v32 = vsel %vm107_vm6, %v95_v18, %v110_v29  ;;  %v114_v33 = vsel %vm108_vm5, %v101_v24, 920167782  ;;  %v118_v34 = vsel %vm108_vm5, %v104_v25, 1326507024  ;;  %v192_v3 = vshrl.u32 %v720_v61, %v191_v23 }
  0x52   :  { %v115_v36 = vsel %vm107_vm6, %v98_v20, %v114_v33  ;;  %v119_v37 = vsel %vm107_vm6, %v101_v24, %v118_v34  ;;  %v194_v38 = vshrl.u32 %v721_v63, %v191_v23  ;;  %v112_v39 = vsel %vm106_vm4, %v109_v28, %v111_v32 }
  0x53   :  { %586 = vmatpush3.bf16.msra.mxu0 %v585_v50  ;;  %v116_v40 = vsel %vm106_vm4, %v113_v30, %v115_v36  ;;  %v120_v41 = vsel %vm106_vm4, %v117_v31, %v119_v37  ;;  %v197_v42 = vshrl.u32 %v722_v1, %v191_v23  ;;  %v199_v49 = vshll.u32 %v722_v1, %v817_v57 }
  0x54   :  { %v856_v43 = vmul.u32.u64.low %v815_v56, %v120_v41  ;;  %v857_v44 = vmul.u32.u64.high %v815_v56, %v120_v41, %v856_v43  ;;  %v860_v45 = vmul.u32.u64.low %v815_v56, %v116_v40  ;;  %v861_v46 = vmul.u32.u64.high %v815_v56, %v116_v40, %v860_v45 }
  0x55   :  { %v195_v47 = vor.u32 %v194_v38, %v193_v26  ;;  %v198_v48 = vor.u32 %v197_v42, %v196_v35  ;;  %v200_v50 = vshrl.u32 %v723_v4, %v191_v23  ;;  %v202_v51 = vshll.u32 %v723_v4, %v817_v57 }
  0x56   :  { %v203_v52 = vshrl.u32 %v724_v6, %v191_v23  ;;  %v205_v53 = vshll.u32 %v724_v6, %v817_v57  ;;  %v206_v54 = vshrl.u32 %v725_v14, %v191_v23  ;;  %v128_v55 = vmul.u32 %v815_v56, %v112_v39 }
  0x57   :  { %v201_v60 = vor.u32 %v200_v50, %v199_v49  ;;  %vm208_vm7 = vcmp.lt.s32.totalorder %v828_v8, 1  ;;  %vm209_vm8 = vcmp.lt.s32.totalorder %v828_v8, 2  ;;  %vm130_vm9 = vc.u32 %v857_v44, %v860_v45 }
  0x58   :  { %v131_v62 = vadd.s32 1, %v861_v46  ;;  %v204_v0 = vor.u32 %v203_v52, %v202_v51  ;;  %vm210_vm10 = vcmp.lt.s32.totalorder %v828_v8, 3  ;;  %v207_v2 = vor.u32 %v206_v54, %v205_v53 }
  0x59   :  { %vm211_vm11 = vcmp.lt.s32.totalorder %v828_v8, 4  ;;  %v212_v57 = vsel %vm208_vm7, %v192_v3, %v195_v47  ;;  %v216_v5 = vsel %vm208_vm7, %v195_v47, %v198_v48  ;;  %v220_v10 = vsel %vm208_vm7, %v198_v48, %v201_v60 }
  0x5a   :  { %v132_v56 = vsel %vm130_vm9, %v131_v62, %v861_v46  ;;  %v213_v7 = vsel %vm211_vm11, %v201_v60, 2102212464  ;;  %v217_v9 = vsel %vm211_vm11, %v204_v0, 920167782  ;;  %v221_v15 = vsel %vm211_vm11, %v207_v2, 1326507024 }
  0x5b   :  { %v133_v11 = vadd.s32 %v132_v56, %v128_v55  ;;  %v214_v12 = vsel %vm210_vm10, %v198_v48, %v213_v7  ;;  %v218_v13 = vsel %vm210_vm10, %v201_v60, %v217_v9  ;;  %v222_v20 = vsel %vm210_vm10, %v204_v0, %v221_v15 }
  0x5c   :  { %v215_v16 = vsel %vm209_vm8, %v212_v57, %v214_v12  ;;  %v219_v18 = vsel %vm209_vm8, %v216_v5, %v218_v13  ;;  %v223_v24 = vsel %vm209_vm8, %v220_v10, %v222_v20  ;;  %v292_v30 = vsel %vm291_vm12, %v821_v59, 0 }
  0x5d   :  { %v134_v23 = vadd.s32 536870912, %v133_v11  ;;  %v890_v25 = vmul.u32.u64.low %v819_v58, %v219_v18  ;;  %v891_v26 = vmul.u32.u64.high %v819_v58, %v219_v18, %v890_v25  ;;  %v294_v32 = vand.u32 31, %v292_v30 }
  0x5e   :  { %v895_v28 = vmul.u32.u64.low %v819_v58, %v223_v24  ;;  %v896_v29 = vmul.u32.u64.high %v819_v58, %v223_v24, %v895_v28  ;;  %v231_v33 = vmul.u32 %v819_v58, %v215_v16  ;;  %v280_v34 = vand.u32 2147483647, %v792_v21 }
  0x5f   :  { %v899_v31 = vshrl.u32 %v134_v23, 30  ;;  %v234_v35 = vadd.s32 1, %v891_v26  ;;  %v295_v36 = vsub.s32 32, %v294_v32  ;;  %v297_v58 = vshll.u32 %v720_v61, %v294_v32 }
  0x60   :  { %vm233_vm13 = vc.u32 %v896_v29, %v890_v25  ;;  %v287_v38 = vand.u32 8388607, %v280_v34  ;;  %v300_v41 = vshll.u32 %v721_v63, %v294_v32  ;;  %v306_v46 = vshll.u32 %v723_v4, %v294_v32 }
  0x61   :  { %v136_v8 = vshll.u32 %v899_v31, 30  ;;  %v235_v3 = vsel %vm233_vm13, %v234_v35, %v891_v26  ;;  %v298_v40 = vshrl.u32 %v721_v63, %v295_v36  ;;  %v301_v42 = vshrl.u32 %v722_v1, %v295_v36 }
  0x62   :  { %v236_v59 = vadd.s32 %v235_v3, %v231_v33  ;;  %v293_v48 = vshrl.u32 %v292_v30, 5  ;;  %v303_v49 = vshll.u32 %v722_v1, %v294_v32  ;;  %v304_v50 = vshrl.u32 %v723_v4, %v295_v36 }
  0x63   :  { %v907_v37 = vsub.s32 %v133_v11, %v136_v8  ;;  %v288_v52 = vor.u32 8388608, %v287_v38  ;;  %v307_v53 = vshrl.u32 %v724_v6, %v295_v36  ;;  %v299_v55 = vor.u32 %v298_v40, %v297_v58 }
  0x64   :  { %v237_v43 = vadd.s32 536870912, %v236_v59  ;;  %v302_v63 = vor.u32 %v301_v42, %v300_v41  ;;  %v309_v0 = vshll.u32 %v724_v6, %v294_v32  ;;  %v310_v2 = vshrl.u32 %v725_v14, %v295_v36 }
  0x65   :  { %v139_v39 = vsub.s32 0, %v907_v37  ;;  %v308_v62 = vor.u32 %v307_v53, %v306_v46  ;;  %v305_v5 = vor.u32 %v304_v50, %v303_v49  ;;  %vm312_vm14 = vcmp.lt.s32.totalorder %v293_v48, 1 }
  0x66   :  { %v921_v51 = vshrl.u32 %v237_v43, 30  ;;  %vm315_vm15 = vcmp.lt.s32.totalorder %v293_v48, 4  ;;  %v296_v4 = vshrl.u32 %v720_v61, %v295_v36  ;;  %vm314_vm0 = vcmp.lt.s32.totalorder %v293_v48, 3 }
  0x67   :  { %v499_v47 = vmin.u32 %v139_v39, %v907_v37  ;;  %v328_v56 = vshll.u32 %v288_v52, 8  ;;  %vm313_vm2 = vcmp.lt.s32.totalorder %v293_v48, 2  ;;  %v317_v7 = vsel %vm315_vm15, %v305_v5, 2102212464 }
  0x68   :  { %v239_v60 = vshll.u32 %v921_v51, 30  ;;  %v321_v9 = vsel %vm315_vm15, %v308_v62, 920167782  ;;  %v311_v6 = vor.u32 %v310_v2, %v309_v0  ;;  %v320_v14 = vsel %vm312_vm14, %v299_v55, %v302_v63 }
  0x69   :  { %v141_v54 = vclz %v499_v47  ;;  %v322_v13 = vsel %vm314_vm0, %v305_v5, %v321_v9  ;;  %v129_v15 = vadd.s32 %v860_v45, %v857_v44  ;;  %v316_v16 = vsel %vm312_vm14, %v296_v4, %v299_v55 }
  0x6a   :  { %v240_v1 = vsub.s32 %v236_v59, %v239_v60  ;;  %v318_v18 = vsel %vm314_vm0, %v302_v63, %v317_v7  ;;  %v323_v24 = vsel %vm313_vm2, %v320_v14, %v322_v13  ;;  %v324_v26 = vsel %vm312_vm14, %v302_v63, %v305_v5 }
  0x6b   :  { %v500_v57 = vadd.s32 4294967294, %v141_v54  ;;  %v325_v30 = vsel %vm315_vm15, %v311_v6, 1326507024  ;;  %v939_v32 = vmul.u32.u64.low %v328_v56, %v323_v24  ;;  %v940_v33 = vmul.u32.u64.high %v328_v56, %v323_v24, %v939_v32 }
  0x6c   :  { %v242_v11 = vsub.s32 0, %v240_v1  ;;  %v326_v8 = vsel %vm314_vm0, %v308_v62, %v325_v30  ;;  %v319_v35 = vsel %vm313_vm2, %v316_v16, %v318_v18  ;;  %v232_v39 = vadd.s32 %v890_v25, %v896_v29 }
  0x6d   :  { %vm501_vm1 = vcmp.lt.s32.totalorder %v500_v57, 0  ;;  %v327_v36 = vsel %vm313_vm2, %v324_v26, %v326_v8  ;;  %v338_v40 = vadd.s32 1, %v940_v33  ;;  %v335_v42 = vmul.u32 %v328_v56, %v319_v35 }
  0x6e   :  { %v144_v10 = vsel %vm501_vm1, 0, %v500_v57  ;;  %v503_v61 = vmin.u32 %v242_v11, %v240_v1  ;;  %v946_v38 = vmul.u32.u64.low %v328_v56, %v327_v36  ;;  %v947_v58 = vmul.u32.u64.high %v328_v56, %v327_v36, %v946_v38 }
  0x6f   :  { %v149_v12 = vsub.s32 4294967266, %v144_v10  ;;  %v145_v20 = vsub.s32 32, %v144_v10  ;;  %v146_v44 = vshll.u32 %v907_v37, %v144_v10  ;;  %vm75_vm5 = vcmp.lt.s32.totalorder %v788_v17, 0 }
  0x70   :  { %v244_v28 = vclz %v503_v61  ;;  %vm337_vm4 = vc.u32 %v947_v58, %v939_v32  ;;  %vm178_vm6 = vcmp.lt.s32.totalorder %v790_v19, 0  ;;  %vm958_vm7 = vcmp.le.f32.partialorder %v73_v22, 0.7853982 }
  0x71   :  { %v150_v23 = vadd.s32 127, %v149_v12  ;;  %v147_v3 = vshrl.u32 %v129_v15, %v145_v20  ;;  %v339_v52 = vsel %vm337_vm4, %v338_v40, %v940_v33  ;;  %vm966_vm8 = vcmp.le.f32.partialorder %v176_v27, 0.7853982 }
  0x72   :  { %v504_v45 = vadd.s32 4294967294, %v244_v28  ;;  %v340_v53 = vadd.s32 %v339_v52, %v335_v42  ;;  %v336_v61 = vadd.s32 %v939_v32, %v947_v58  ;;  %v159_v24 = vsub.s32 4, %v899_v31 }
  0x73   :  { %v151_v59 = vshll.u32 %v150_v23, 23  ;;  %v148_v47 = vor.u32 %v147_v3, %v146_v44  ;;  %v262_v30 = vsub.s32 4, %v921_v51  ;;  %vm282_vm10 = vcmp.lt.s32.totalorder %v792_v21, 0 }
  0x74   :  { %vm505_vm3 = vcmp.lt.s32.totalorder %v504_v45, 0  ;;  %v341_v63 = vadd.s32 536870912, %v340_v53  ;;  %v160_v8 = vsel %vm75_vm5, %v159_v24, %v899_v31  ;;  %vm994_vm11 = vcmp.le.f32.partialorder %v280_v34, 0.7853982 }
  0x75   :  { %v247_v41 = vsel %vm505_vm3, 0, %v504_v45  ;;  %v152_v49 = vor.u32 4788187, %v151_v59  ;;  %v155_v29 = vcvt.s32.f32 %v148_v47  ;;  %v263_v35 = vsel %vm178_vm6, %v262_v30, %v921_v51 }
  0x76   :  { %v248_v43 = vsub.s32 32, %v247_v41  ;;  %v249_v37 = vshll.u32 %v240_v1, %v247_v41  ;;  %v252_v46 = vsub.s32 4294967266, %v247_v41  ;;  %v342_v0 = vshrl.u32 %v341_v63, 30 }
  0x77   :  { %v153_v25 = vand.u32 2147483647, %v152_v49  ;;  %v162_v36 = vsel %vm958_vm7, 0, %v160_v8  ;;  %v265_v38 = vsel %vm966_vm8, 0, %v263_v35  ;;  %vm165_vm2 = vweird.f32 %v788_v17 }
  0x78   :  { %v250_v48 = vshrl.u32 %v232_v39, %v248_v43  ;;  %v253_v50 = vadd.s32 127, %v252_v46  ;;  %v343_v5 = vshll.u32 %v342_v0, 30  ;;  %v166_v40 = vand.u32 3, %v162_v36 }
  0x79   :  { %v156_v57 = vmul.f32 %v155_v29, %v153_v25  ;;  %v366_v31 = vsub.s32 4, %v342_v0  ;;  %vm268_vm3 = vweird.f32 %v790_v19 }
  0x7a   :  { %v251_v54 = vor.u32 %v250_v48, %v249_v37  ;;  %v254_v55 = vshll.u32 %v253_v50, 23  ;;  %v344_v4 = vsub.s32 %v340_v53, %v343_v5  ;;  %v269_v37 = vand.u32 3, %v265_v38 }
  0x7b   :  { %v157_v56 = vxor.u32 2147483648, %v156_v57  ;;  %vm168_vm12 = vcmp.eq.s32.totalorder %v166_v40, 0  ;;  %v367_v49 = vsel %vm282_vm10, %v366_v31, %v342_v0  ;;  %vm171_vm13 = vcmp.eq.s32.totalorder %v166_v40, 2 }
  0x7c   :  { %v255_v60 = vor.u32 4788187, %v254_v55  ;;  %v258_v62 = vcvt.s32.f32 %v251_v54  ;;  %v346_v7 = vsub.s32 0, %v344_v4  ;;  %vm271_vm14 = vcmp.eq.s32.totalorder %v269_v37, 0 }
  0x7d   :  { %v158_v6 = vsel %vm75_vm5, %v157_v56, %v156_v57  ;;  %vm274_vm15 = vcmp.eq.s32.totalorder %v269_v37, 2  ;;  %vm167_vm0 = vcmp.lt.s32.totalorder %v166_v40, 2  ;;  %vm270_vm1 = vcmp.lt.s32.totalorder %v269_v37, 2 }
  0x7e   :  { %v256_v2 = vand.u32 2147483647, %v255_v60  ;;  %v507_v10 = vmin.u32 %v346_v7, %v344_v4  ;;  %v161_v22 = vsel %vm958_vm7, %v788_v17, %v158_v6  ;;  %v369_v34 = vsel %vm994_vm11, 0, %v367_v49 }
  0x7f   :  { %614 = vcosq.f32 %v161_v22  ;;  %v373_v63 = vand.u32 3, %v369_v34  ;;  %vm372_vm7 = vweird.f32 %v792_v21 }
  0x80   :  { %v259_v1 = vmul.f32 %v258_v62, %v256_v2  ;;  %v348_v14 = vclz %v507_v10  ;;  %616 = vsinq.f32 %v161_v22 }
  0x81   :  { %vm378_vm4 = vcmp.eq.s32.totalorder %v373_v63, 2  ;;  %vm375_vm5 = vcmp.eq.s32.totalorder %v373_v63, 0 }
  0x82   :  { %v260_v9 = vxor.u32 2147483648, %v259_v1  ;;  %v508_v15 = vadd.s32 4294967294, %v348_v14 }
  0x84   :  { %v261_v13 = vsel %vm178_vm6, %v260_v9, %v259_v1  ;;  %vm509_vm9 = vcmp.lt.s32.totalorder %v508_v15, 0  ;;  %vm374_vm6 = vcmp.lt.s32.totalorder %v373_v63, 2 }
  0x85   :  { %v264_v16 = vsel %vm966_vm8, %v790_v19, %v261_v13  ;;  %v351_v18 = vsel %vm509_vm9, 0, %v508_v15  ;;  %v510_v19 = vld [vmem:[%s1024_s3] ss:$0 sm:$0xff] }
  0x86   :  { %v352_v27 = vsub.s32 32, %v351_v18  ;;  %v353_v20 = vshll.u32 %v344_v4, %v351_v18  ;;  %v356_v23 = vsub.s32 4294967266, %v351_v18  ;;  %618 = vcosq.f32 %v264_v16 }
  0x87   :  { %620 = vsinq.f32 %v264_v16 }
  0x88   :  { %v354_v26 = vshrl.u32 %v336_v61, %v352_v27  ;;  %v357_v28 = vadd.s32 127, %v356_v23 }
  0x89   :  { %v615_v59 = vpop.eup %614 }
  0x8a   :  { %v355_v32 = vor.u32 %v354_v26, %v353_v20  ;;  %v358_v33 = vshll.u32 %v357_v28, 23  ;;  %v617_v39 = vpop.eup %616  ;;  %v172_v47 = vxor.u32 2147483648, %v615_v59 }
  0x8b   :  { %v169_v50 = vxor.u32 2147483648, %v617_v39 }
  0x8c   :  { %v359_v44 = vor.u32 4788187, %v358_v33  ;;  %v362_v45 = vcvt.s32.f32 %v355_v32  ;;  %v173_v55 = vsel %vm171_vm13, %v172_v47, %v617_v39 }
  0x8d   :  { %v170_v54 = vsel %vm168_vm12, %v615_v59, %v169_v50 }
  0x8e   :  { %v360_v3 = vand.u32 2147483647, %v359_v44  ;;  %v174_v60 = vsel %vm167_vm0, %v170_v54, %v173_v55 }
  0x8f   :  { %v175_v2 = vsel %vm165_vm2, nan, %v174_v60 }
  0x90   :  { %v363_v58 = vmul.f32 %v362_v45, %v360_v3  ;;  %v619_v41 = vpop.eup %618 }
  0x91   :  { %v621_v43 = vpop.eup %620  ;;  %v275_v53 = vxor.u32 2147483648, %v619_v41 }
  0x92   :  { %v364_v51 = vxor.u32 2147483648, %v363_v58  ;;  %v272_v52 = vxor.u32 2147483648, %v621_v43 }
  0x93   :  { %v276_v29 = vsel %vm274_vm15, %v275_v53, %v621_v43 }
  0x94   :  { %v365_v46 = vsel %vm282_vm10, %v364_v51, %v363_v58  ;;  %v273_v25 = vsel %vm271_vm14, %v619_v41, %v272_v52 }
  0x95   :  { %v368_v48 = vsel %vm994_vm11, %v792_v21, %v365_v46  ;;  %v277_v62 = vsel %vm270_vm1, %v273_v25, %v276_v29 }
  0x96   :  { %622 = vcosq.f32 %v368_v48  ;;  %v278_v57 = vsel %vm268_vm3, nan, %v277_v62 }
  0x97   :  { %624 = vsinq.f32 %v368_v48  ;;  %v279_v56 = vadd.f32 %v278_v57, %v175_v2 }
  0xa0   :  { %v623_v0 = vpop.eup %622 }
  0xa1   :  { %v625_v5 = vpop.eup %624  ;;  %v379_v1 = vxor.u32 2147483648, %v623_v0 }
  0xa2   :  { %v376_v4 = vxor.u32 2147483648, %v625_v5 }
  0xa3   :  { %v380_v7 = vsel %vm378_vm4, %v379_v1, %v625_v5 }
  0xa4   :  { %v377_v9 = vsel %vm375_vm5, %v623_v0, %v376_v4 }
  0xa5   :  { %v381_v10 = vsel %vm374_vm6, %v377_v9, %v380_v7 }
  0xa6   :  { %v382_v17 = vsel %vm372_vm7, nan, %v381_v10 }
  0xa7   :  { %v383_v11 = vadd.f32 %v382_v17, %v279_v56 }
  0xa9   :  { %v384_v6 = vmul.f32 0.33333334, %v383_v11 }
  0xab   :  { %561 = vmatmul.mubr.f32.vlgmr.msra.gmra.mrb[0].mxu0 %v384_v6 }
 0x17e   :  { %v474_v14 = vpop.f32.mrb[0].mxu0 }
 0x17f   :  { %v475_v12 = vadd.f32 %v510_v19, %v474_v14  ;;  %v562_v13 = vpop.f32.mrb[1].mxu0 }
 0x181   :  { %478 = vst [vmem:[#allocation9] sm:$0xff] %v475_v12 }
 0x182   :  { %693 = shalt.err (!%p690_p11)
}
 0x183   :  { %s694_s27 = scalar_lea.hbm %s1025_s4, 128 }
 0x184   :  { %p695_p12 = scmp.ne.s32.totalorder %s1025_s4, %s694_s27  ;;  %p698_p13 = scmp.lt.u32.totalorder %s694_s27, %s1025_s4 }
 0x186   :  { %p700_p0 = pnand %p698_p13, %p695_p12 }
 0x188   :  { %703 = shalt.err (!%p700_p0)
}
 0x189   :  { %488 = dma.vmem_to_hbm [thread:$0]  %s486_s23, 128, %s1025_s4, [#allocation4]  }
 0x18a   :  { %710 = dma.done.wait [#allocation4], 128  }
 0x18b   :  { %711 = vsyncadd [#allocation4], 4294967168 }
 0x18c   :  { %492 = vsyncpa [#allocation3], 1 }
 0x18d   :  { %493 = vsyncpa [#allocation8], 1 }
 0x18e   :  { %494 = vsyncpa [#allocation4], 1 }
 0x18f   :  { %495 = vsyncpa [#allocation5], 1 }

</bundles_post_ra>
